<compile_context>
chip_gen: v6e
topology: v6e:2x2x1
jax: 0.10.0
libtpu: 0.0.40
codegen_flags: <defaults>
</compile_context>

<pallas_src>
import jax
import jax.numpy as jnp
import numpy as np
from jax.experimental import pallas as pl
from jax.experimental.pallas import tpu as pltpu

STATE_SIZE = 4
H1 = 40
H2 = 40
OUT = 1

LANES = 128          # padded hidden width (lane-dense activations)
W1_OFF = 0           # rows 0..7   : W1 (4 valid rows, padded to 8 sublanes)
W2_OFF = 8           # rows 8..135 : W2 (40x40 valid, padded to 128x128)
B1_ROW = W2_OFF + LANES          # 136
B2_ROW = B1_ROW + 1              # 137
W3_ROW = B2_ROW + 1              # 138  (w3[:, 0] as a lane vector)
B3_ROW = W3_ROW + 1              # 139  (b3 broadcast across all lanes)
P_ROWS = 144                     # padded to a multiple of 8 sublanes


def _round_up(n, m):
    return (n + m - 1) // m * m


def critic_kernel(x_ref, p_ref, o_ref):
    x = x_ref[...]                                   # [TB, 4]  f32
    tb = x.shape[0]

    b1 = p_ref[B1_ROW:B1_ROW + 1, :]                 # [1, 128]
    b2 = p_ref[B2_ROW:B2_ROW + 1, :]                 # [1, 128]
    w3 = p_ref[W3_ROW:W3_ROW + 1, :]                 # [1, 128]
    b3 = p_ref[B3_ROW:B3_ROW + 1, :]                 # [1, 128] (all lanes = b3)

    # ---- Layer 1 on the VPU: K=4 would waste the MXU; 4 broadcast FMAs. ----
    h1 = jnp.broadcast_to(b1, (tb, LANES))
    for k in range(STATE_SIZE):
        h1 = h1 + x[:, k:k + 1] * p_ref[W1_OFF + k:W1_OFF + k + 1, :]
    h1 = jnp.maximum(h1, 0.0)                        # ReLU, [TB, 128]

    # ---- Layer 2 on the MXU: the only real matmul (40x40 padded to 128). ----
    w2 = p_ref[W2_OFF:W2_OFF + LANES, :]             # [128, 128]
    h2 = jnp.dot(h1, w2, preferred_element_type=jnp.float32) + b2
    h2 = jnp.maximum(h2, 0.0)                        # ReLU, [TB, 128]

    # ---- Layer 3 on the VPU + lane reduction (N=1, keep off the MXU). ----
    val = jnp.sum(h2 * w3, axis=-1, keepdims=True)   # [TB, 1]
    # Lane-dense (unmasked) store: every lane carries the critic value;
    # the wrapper slices column 0.
    o_ref[...] = jnp.broadcast_to(val, (tb, LANES)) + b3


def pack_params(params):
    """Pack all weights/biases into one zero-padded, lane-dense VMEM buffer."""
    w1, b1, w2, b2, w3, b3 = params
    p = jnp.zeros((P_ROWS, LANES), jnp.float32)
    p = p.at[W1_OFF:W1_OFF + STATE_SIZE, :H1].set(w1)      # [4, 40]
    p = p.at[W2_OFF:W2_OFF + H1, :H2].set(w2)              # [40, 40]
    p = p.at[B1_ROW, :H1].set(b1[0])
    p = p.at[B2_ROW, :H2].set(b2[0])
    p = p.at[W3_ROW, :H2].set(w3[:, 0])
    p = p.at[B3_ROW, :].set(b3[0, 0])                      # scalar -> all lanes
    return p


def critic_net_forward(x, packed):
    """x: [B, 4] f32, packed: [144, 128] f32 -> [B, 1] f32."""
    B = x.shape[0]
    TB = min(512, _round_up(B, 8))        # batch row tile (sublane aligned)
    B_pad = _round_up(B, TB)
    if B_pad != B:
        x = jnp.pad(x, ((0, B_pad - B), (0, 0)))

    out = pl.pallas_call(
        critic_kernel,
        out_shape=jax.ShapeDtypeStruct((B_pad, LANES), jnp.float32),
        grid=(B_pad // TB,),
        in_specs=[
            pl.BlockSpec((TB, STATE_SIZE), lambda i: (i, 0)),   # batch tile of x
            pl.BlockSpec((P_ROWS, LANES), lambda i: (0, 0)),    # weights resident
        ],
        out_specs=pl.BlockSpec((TB, LANES), lambda i: (i, 0)),
        compiler_params=pltpu.CompilerParams(
            dimension_semantics=("parallel",),
        ),
    )(x, packed)
    return out[:B, :OUT]


def init_params(key):
    """Deterministic init mimicking PyTorch nn.Linear default:
    U(-1/sqrt(fan_in), 1/sqrt(fan_in)) for both weights and biases."""
    def linear(k, fan_in, fan_out):
        kw, kb = jax.random.split(k)
        bound = 1.0 / np.sqrt(fan_in)
        w = jax.random.uniform(kw, (fan_in, fan_out), jnp.float32, -bound, bound)
        b = jax.random.uniform(kb, (1, fan_out), jnp.float32, -bound, bound)
        return w, b

    k1, k2, k3 = jax.random.split(key, 3)
    w1, b1 = linear(k1, STATE_SIZE, H1)
    w2, b2 = linear(k2, H1, H2)
    w3, b3 = linear(k3, H2, OUT)
    return w1, b1, w2, b2, w3, b3


def reference_forward(x, params):
    w1, b1, w2, b2, w3, b3 = params
    h1 = jnp.maximum(x @ w1 + b1, 0.0)
    h2 = jnp.maximum(h1 @ w2 + b2, 0.0)
    return h2 @ w3 + b3


if __name__ == "__main__":
    key = jax.random.PRNGKey(0)
    kx, kp = jax.random.split(key)

    params = init_params(kp)
    packed = pack_params(params)   # pack once; reused by every forward call

    # Main check: small batch of CartPole states.
    B = 8
    x = jax.random.normal(kx, (B, STATE_SIZE), dtype=jnp.float32)
    out = jax.block_until_ready(critic_net_forward(x, packed))
    ref = reference_forward(x, params)
    assert out.shape == (B, OUT)
    np.testing.assert_allclose(np.asarray(out), np.asarray(ref), rtol=1e-5, atol=1e-5)

    # Also exercise the batch-padding path (B not a multiple of 8).
    x5 = jax.random.normal(jax.random.PRNGKey(1), (5, STATE_SIZE), dtype=jnp.float32)
    out5 = jax.block_until_ready(critic_net_forward(x5, packed))
    ref5 = reference_forward(x5, params)
    assert out5.shape == (5, OUT)
    np.testing.assert_allclose(np.asarray(out5), np.asarray(ref5), rtol=1e-5, atol=1e-5)

    print("KERNEL_OK")
</pallas_src>

<mosaic_0001>
module attributes {stable_mosaic.version = 11 : i64} {
  func.func @critic_kernel(%arg0: i32, %arg1: memref<8x4xf32, #tpu.memory_space<vmem>>, %arg2: memref<144x128xf32, #tpu.memory_space<vmem>>, %arg3: memref<8x128xf32, #tpu.memory_space<vmem>>) attributes {dimension_semantics = [#tpu.dimension_semantics<parallel>], iteration_bounds = array<i64: 1>, scalar_prefetch = 0 : i64, scratch_operands = 0 : i64, tpu.core_type = #tpu.core_type<tc>, window_params = [{transform_indices = @transform_0, window_bounds = array<i64: 8, 4>}, {pipeline_mode = #tpu.pipeline_mode<synchronous>, transform_indices = @transform_1, window_bounds = array<i64: 144, 128>}, {transform_indices = @transform_2, window_bounds = array<i64: 8, 128>}]} {
    %c0 = arith.constant 0 : index
    %c0_0 = arith.constant 0 : index
    %0 = vector.load %arg1[%c0, %c0_0] : memref<8x4xf32, #tpu.memory_space<vmem>>, vector<8x4xf32>
    %c136 = arith.constant 136 : index
    %c0_1 = arith.constant 0 : index
    %1 = vector.load %arg2[%c136, %c0_1] : memref<144x128xf32, #tpu.memory_space<vmem>>, vector<1x128xf32>
    %c137 = arith.constant 137 : index
    %c0_2 = arith.constant 0 : index
    %2 = vector.load %arg2[%c137, %c0_2] : memref<144x128xf32, #tpu.memory_space<vmem>>, vector<1x128xf32>
    %c138 = arith.constant 138 : index
    %c0_3 = arith.constant 0 : index
    %3 = vector.load %arg2[%c138, %c0_3] : memref<144x128xf32, #tpu.memory_space<vmem>>, vector<1x128xf32>
    %c139 = arith.constant 139 : index
    %c0_4 = arith.constant 0 : index
    %4 = vector.load %arg2[%c139, %c0_4] : memref<144x128xf32, #tpu.memory_space<vmem>>, vector<1x128xf32>
    %5 = vector.shape_cast %1 : vector<1x128xf32> to vector<1x128xf32>
    %6 = vector.broadcast %5 : vector<1x128xf32> to vector<8x128xf32>
    %7 = vector.extract_strided_slice %0 {offsets = [0, 0], sizes = [8, 1], strides = [1, 1]} : vector<8x4xf32> to vector<8x1xf32>
    %c0_5 = arith.constant 0 : index
    %c0_6 = arith.constant 0 : index
    %8 = vector.load %arg2[%c0_5, %c0_6] : memref<144x128xf32, #tpu.memory_space<vmem>>, vector<1x128xf32>
    %9 = vector.broadcast %7 : vector<8x1xf32> to vector<8x128xf32>
    %10 = vector.broadcast %8 : vector<1x128xf32> to vector<8x128xf32>
    %11 = arith.mulf %9, %10 : vector<8x128xf32>
    %12 = arith.addf %6, %11 : vector<8x128xf32>
    %13 = vector.extract_strided_slice %0 {offsets = [0, 1], sizes = [8, 1], strides = [1, 1]} : vector<8x4xf32> to vector<8x1xf32>
    %c1 = arith.constant 1 : index
    %c0_7 = arith.constant 0 : index
    %14 = vector.load %arg2[%c1, %c0_7] : memref<144x128xf32, #tpu.memory_space<vmem>>, vector<1x128xf32>
    %15 = vector.broadcast %13 : vector<8x1xf32> to vector<8x128xf32>
    %16 = vector.broadcast %14 : vector<1x128xf32> to vector<8x128xf32>
    %17 = arith.mulf %15, %16 : vector<8x128xf32>
    %18 = arith.addf %12, %17 : vector<8x128xf32>
    %19 = vector.extract_strided_slice %0 {offsets = [0, 2], sizes = [8, 1], strides = [1, 1]} : vector<8x4xf32> to vector<8x1xf32>
    %c2 = arith.constant 2 : index
    %c0_8 = arith.constant 0 : index
    %20 = vector.load %arg2[%c2, %c0_8] : memref<144x128xf32, #tpu.memory_space<vmem>>, vector<1x128xf32>
    %21 = vector.broadcast %19 : vector<8x1xf32> to vector<8x128xf32>
    %22 = vector.broadcast %20 : vector<1x128xf32> to vector<8x128xf32>
    %23 = arith.mulf %21, %22 : vector<8x128xf32>
    %24 = arith.addf %18, %23 : vector<8x128xf32>
    %25 = vector.extract_strided_slice %0 {offsets = [0, 3], sizes = [8, 1], strides = [1, 1]} : vector<8x4xf32> to vector<8x1xf32>
    %c3 = arith.constant 3 : index
    %c0_9 = arith.constant 0 : index
    %26 = vector.load %arg2[%c3, %c0_9] : memref<144x128xf32, #tpu.memory_space<vmem>>, vector<1x128xf32>
    %27 = vector.broadcast %25 : vector<8x1xf32> to vector<8x128xf32>
    %28 = vector.broadcast %26 : vector<1x128xf32> to vector<8x128xf32>
    %29 = arith.mulf %27, %28 : vector<8x128xf32>
    %30 = arith.addf %24, %29 : vector<8x128xf32>
    %cst = arith.constant 0.000000e+00 : f32
    %31 = vector.broadcast %cst : f32 to vector<8x128xf32>
    %32 = arith.maximumf %30, %31 : vector<8x128xf32>
    %c8 = arith.constant 8 : index
    %c0_10 = arith.constant 0 : index
    %33 = vector.load %arg2[%c8, %c0_10] : memref<144x128xf32, #tpu.memory_space<vmem>>, vector<128x128xf32>
    %cst_11 = arith.constant dense<0.000000e+00> : vector<8x128xf32>
    %34 = tpu.matmul %32, %33, %cst_11 {dimension_numbers = #tpu.dot_dimension_numbers<[1], [0], [0], [1], [0, 0, 1, 1], [], []>} : vector<8x128xf32>, vector<128x128xf32>, vector<8x128xf32> -> vector<8x128xf32>
    %35 = vector.broadcast %2 : vector<1x128xf32> to vector<8x128xf32>
    %36 = arith.addf %34, %35 : vector<8x128xf32>
    %cst_12 = arith.constant 0.000000e+00 : f32
    %37 = vector.broadcast %cst_12 : f32 to vector<8x128xf32>
    %38 = arith.maximumf %36, %37 : vector<8x128xf32>
    %39 = vector.broadcast %3 : vector<1x128xf32> to vector<8x128xf32>
    %40 = arith.mulf %38, %39 : vector<8x128xf32>
    %cst_13 = arith.constant dense<0.000000e+00> : vector<8xf32>
    %41 = vector.multi_reduction <add>, %40, %cst_13 [1] : vector<8x128xf32> to vector<8xf32>
    %42 = vector.shape_cast %41 : vector<8xf32> to vector<8x1xf32>
    %43 = vector.shape_cast %42 : vector<8x1xf32> to vector<8x1xf32>
    %44 = vector.broadcast %43 : vector<8x1xf32> to vector<8x128xf32>
    %45 = vector.broadcast %4 : vector<1x128xf32> to vector<8x128xf32>
    %46 = arith.addf %44, %45 : vector<8x128xf32>
    %c0_14 = arith.constant 0 : index
    %c0_15 = arith.constant 0 : index
    %47 = vector.load %arg3[%c0_14, %c0_15] : memref<8x128xf32, #tpu.memory_space<vmem>>, vector<8x128xf32>
    tpu.vector_store %arg3[%c0_14, %c0_15], %46 {strides = array<i32>} : memref<8x128xf32, #tpu.memory_space<vmem>>, vector<8x128xf32>,
    return
  }
  func.func @transform_0(%arg0: i32) -> (i32, i32) {
    %c0_i32 = arith.constant 0 : i32
    %c0_i32_0 = arith.constant 0 : i32
    return %arg0, %c0_i32 : i32, i32
  }
  func.func @transform_1(%arg0: i32) -> (i32, i32) {
    %c0_i32 = arith.constant 0 : i32
    %c0_i32_0 = arith.constant 0 : i32
    %c0_i32_1 = arith.constant 0 : i32
    return %c0_i32, %c0_i32_0 : i32, i32
  }
  func.func @transform_2(%arg0: i32) -> (i32, i32) {
    %c0_i32 = arith.constant 0 : i32
    %c0_i32_0 = arith.constant 0 : i32
    return %arg0, %c0_i32 : i32, i32
  }
}

</mosaic_0001>

<bundles_post_ra>
// kernel: tpu_custom_call.1
= control target key start
LH: loop header
LB: loop body
LE: loop exit
PB: predicated region body
PF: predicated region fallthrough
CT: control target
= control target key end

     0   :  { %7 = vsyncpa [#allocation3], 0  ;;  %s353_s0 = inlined_call_operand.vmem [shape: f32[8,4], index: 0, kind: input, shape index: {}]   ;;  %s354_s1 = inlined_call_operand.hbm [shape: f32[144,128], index: 1, kind: input, shape index: {}]   ;;  %s355_s2 = inlined_call_operand.hbm [shape: f32[8,128], index: 2, kind: output, shape index: {}]  }
   0x1   :  { %8 = vsyncpa [#allocation4], 0  ;;  %s319_s9 = smov [#allocation2]  }
   0x2   :  { %s16_s10 = sshll.u32 %s319_s9, 4  ;;  %s17_s10 = int_to_ptr.vmem [resolvable:$true] %s16_s10 }
   0x3   :  { %s283_s11 = scalar_lea.vmem %s17_s10, 2304  ;;  %p288_p1 = scmp.lt.s32.totalorder %s17_s10, %s17_s10 }
   0x4   :  { %p284_p0 = scmp.ne.s32.totalorder %s17_s10, %s283_s11  ;;  %p289_p2 = scmp.lt.s32.totalorder %s283_s11, %s283_s11 }
   0x6   :  { %p290_p3 = por %p289_p2, %p288_p1 }
   0x8   :  { %p291_p4 = pnand %p290_p3, %p284_p0 }
   0xa   :  { %294 = shalt.err (!%p291_p4)
}
   0xb   :  { %s320_s12 = smov 128   ;;  %s321_s13 = smov 8  }
   0xc   :  { %22 = dma.hbm_to_vmem [thread:$0]  %s354_s1, 2304, %s17_s10, [#allocation3], %s320_s12, %s320_s12, %s321_s13  }
   0xd   :  { %315 = dma.done.wait [#allocation3], 2304  }
   0xe   :  { %316 = vsyncadd [#allocation3], 4294964992  ;;  %v322_v0 = vmov 0   ;;  %v323_v1 = vmov 2   ;;  %v324_v2 = vmov 0.0   ;;  %v26_v3 = vld [vmem:[%s353_s0] sm:$0xff] }
   0xf   :  { %270 = vset.pattern.permute.xlu0 %v322_v0  ;;  %272 = vset.pattern.permute.xlu1 %v323_v1  ;;  %v96_v4 = vld [vmem:[#allocation2 + $0x80] sm:$0xff]  ;;  %v95_v5 = vld [vmem:[#allocation2 + $0x78] sm:$0xff]  ;;  %v325_v6 = vmov 1   ;;  %v326_v7 = vmov 3   ;;  %v94_v8 = vld [vmem:[#allocation2 + $0x70] sm:$0xff]  ;;  %vm327_vm0 = vmmov 0  }
  0x10   :  { %225 = vmatprep.subr.mxu0 %v324_v2  ;;  %38 = vperm.xlu0 %270, %v26_v3   ;;  %v93_v9 = vld [vmem:[#allocation2 + $0x68] sm:$0xff]  ;;  %v92_v10 = vld [vmem:[#allocation2 + $0x60] sm:$0xff]  ;;  %v91_v11 = vld [vmem:[#allocation2 + $0x58] sm:$0xff]  ;;  %s328_s0 = smov [#allocation5]  }
  0x11   :  { %60 = vperm.xlu1 %272, %v26_v3   ;;  %226 = vmatpush3.msra.mxu0 %v96_v4  ;;  %v90_v12 = vld [vmem:[#allocation2 + $0x50] sm:$0xff]  ;;  %v89_v13 = vld [vmem:[#allocation2 + $0x48] sm:$0xff]  ;;  %v88_v14 = vld [vmem:[#allocation2 + $0x40] sm:$0xff]  ;;  %s191_s1 = sshll.u32 %s328_s0, 4  ;;  %s192_s1 = int_to_ptr.vmem [resolvable:$true] %s191_s1 }
  0x12   :  { %227 = vmatprep.subr.mxu0 %v324_v2  ;;  %257 = vmatprep.mubr.msk.f32.mxu0 %vm327_vm0, %v324_v2  ;;  %v87_v15 = vld [vmem:[#allocation2 + $0x38] sm:$0xff]  ;;  %v86_v16 = vld [vmem:[#allocation2 + $0x30] sm:$0xff]  ;;  %v85_v17 = vld [vmem:[#allocation2 + $0x28] sm:$0xff]  ;;  %s295_s18 = scalar_lea.vmem %s192_s1, 128  ;;  %p300_p6 = scmp.lt.s32.totalorder %s192_s1, %s192_s1 }
  0x13   :  { %228 = vmatpush3.msra.mxu0 %v95_v5  ;;  %v84_v18 = vld [vmem:[#allocation2 + $0x20] sm:$0xff]  ;;  %v83_v19 = vld [vmem:[#allocation2 + $0x18] sm:$0xff]  ;;  %v82_v20 = vld [vmem:[#allocation2 + $0x10] sm:$0xff]  ;;  %p296_p5 = scmp.ne.s32.totalorder %s192_s1, %s295_s18  ;;  %p301_p7 = scmp.lt.s32.totalorder %s295_s18, %s295_s18 }
  0x14   :  { %271 = vset.pattern.permute.xlu0 %v325_v6  ;;  %229 = vmatprep.subr.mxu0 %v324_v2  ;;  %v81_v21 = vld [vmem:[#allocation2 + $0x8] sm:$0xff]  ;;  %v201_v22 = vld [vmem:[#allocation2] ss:$0 sm:$0xff]  ;;  %v202_v27 = vld [vmem:[#allocation2 + $0x1] ss:$0 sm:$0xff] }
  0x15   :  { %273 = vset.pattern.permute.xlu1 %v326_v7  ;;  %49 = vperm.xlu0 %271, %v26_v3   ;;  %v200_v26 = vld [vmem:[#allocation2 + $0x88] ss:$0 sm:$0xff]  ;;  %v203_v28 = vld [vmem:[#allocation2 + $0x2] ss:$0 sm:$0xff]  ;;  %v204_v30 = vld [vmem:[#allocation2 + $0x3] ss:$0 sm:$0xff]  ;;  %p302_p8 = por %p301_p7, %p300_p6 }
  0x16   :  { %71 = vperm.xlu1 %273, %v26_v3   ;;  %230 = vmatpush3.msra.mxu0 %v94_v8  ;;  %v205_v40 = vld [vmem:[#allocation2 + $0x89] ss:$0 sm:$0xff]  ;;  %v206_v44 = vld [vmem:[#allocation2 + $0x8a] ss:$0 sm:$0xff]  ;;  %v207_v47 = vld [vmem:[#allocation2 + $0x8b] ss:$0 sm:$0xff] }
  0x17   :  { %231 = vmatprep.subr.mxu0 %v324_v2  ;;  %p303_p9 = pnand %p302_p8, %p296_p5 }
  0x18   :  { %232 = vmatpush3.msra.mxu0 %v93_v9 }
  0x19   :  { %274 = vset.pattern.permute.xlu0 %v326_v7  ;;  %233 = vmatprep.subr.mxu0 %v324_v2 }
  0x1a   :  { %234 = vmatpush3.msra.mxu0 %v92_v10 }
  0x1b   :  { %235 = vmatprep.subr.mxu0 %v324_v2 }
  0x1c   :  { %236 = vmatpush3.msra.mxu0 %v91_v11 }
  0x1d   :  { %237 = vmatprep.subr.mxu0 %v324_v2 }
  0x1e   :  { %238 = vmatpush3.msra.mxu0 %v90_v12 }
  0x1f   :  { %239 = vmatprep.subr.mxu0 %v324_v2 }
  0x20   :  { %240 = vmatpush3.msra.mxu0 %v89_v13 }
  0x21   :  { %241 = vmatprep.subr.mxu0 %v324_v2 }
  0x22   :  { %242 = vmatpush3.msra.mxu0 %v88_v14 }
  0x23   :  { %243 = vmatprep.subr.mxu0 %v324_v2 }
  0x24   :  { %244 = vmatpush3.msra.mxu0 %v87_v15 }
  0x25   :  { %245 = vmatprep.subr.mxu0 %v324_v2 }
  0x26   :  { %246 = vmatpush3.msra.mxu0 %v86_v16 }
  0x27   :  { %247 = vmatprep.subr.mxu0 %v324_v2 }
  0x28   :  { %248 = vmatpush3.msra.mxu0 %v85_v17 }
  0x29   :  { %249 = vmatprep.subr.mxu0 %v324_v2 }
  0x2a   :  { %250 = vmatpush3.msra.mxu0 %v84_v18 }
  0x2b   :  { %251 = vmatprep.subr.mxu0 %v324_v2 }
  0x2c   :  { %252 = vmatpush3.msra.mxu0 %v83_v19 }
  0x2d   :  { %253 = vmatprep.subr.mxu0 %v324_v2 }
  0x2e   :  { %254 = vmatpush3.msra.mxu0 %v82_v20 }
  0x2f   :  { %255 = vmatprep.subr.mxu0 %v324_v2 }
  0x30   :  { %256 = vmatpush3.msra.mxu0 %v81_v21 }
  0x8b   :  { %v39_v23 = vpop.permute.xlu0 %38 }
  0x8c   :  { %v61_v24 = vpop.permute.xlu1 %60  ;;  %v45_v25 = vmul.f32 %v201_v22, %v39_v23 }
  0x8d   :  { %v67_v34 = vmul.f32 %v203_v28, %v61_v24 }
  0x8e   :  { %v46_v32 = vadd.f32 %v200_v26, %v45_v25 }
  0x90   :  { %v50_v29 = vpop.permute.xlu0 %49 }
  0x91   :  { %v72_v31 = vpop.permute.xlu1 %71  ;;  %v56_v33 = vmul.f32 %v202_v27, %v50_v29 }
  0x92   :  { %v78_v36 = vmul.f32 %v204_v30, %v72_v31 }
  0x93   :  { %v57_v35 = vadd.f32 %v56_v33, %v46_v32 }
  0x95   :  { %v68_v37 = vadd.f32 %v67_v34, %v57_v35 }
  0x97   :  { %v79_v38 = vadd.f32 %v78_v36, %v68_v37 }
  0x99   :  { %v80_v39 = vmax.f32 %v79_v38, 0.0 }
  0x9b   :  { %258 = vmatmul.mubr.f32.vlgmr.msra.gmra.mxu0 %v80_v39 }
 0x15b   :  { %v167_v41 = vpop.f32.mrf.mxu0 }
 0x15c   :  { %v168_v42 = vadd.f32 %v205_v40, %v167_v41 }
 0x15d   :  { %v259_v43 = vpop.f32.mrf.mxu0 }
 0x15e   :  { %v171_v45 = vmax.f32 %v168_v42, 0.0 }
 0x160   :  { %v176_v46 = vmul.f32 %v206_v44, %v171_v45 }
 0x162   :  { %177 = vadd.xlane.f32.xlu1 %v176_v46 }
 0x1eb   :  { %v178_v48 = vpop.xlane.xlu1 %177 }
 0x1ec   :  { %v183_v49 = vadd.f32 %v207_v47, %v178_v48 }
 0x1ee   :  { %184 = vst [vmem:[#allocation5] sm:$0xff] %v183_v49 }
 0x1ef   :  { %306 = shalt.err (!%p303_p9)
}
 0x1f0   :  { %194 = dma.vmem_to_hbm [thread:$0]  %s192_s1, 128, %s355_s2, [#allocation4]  }
 0x1f1   :  { %317 = dma.done.wait [#allocation4], 128  }
 0x1f2   :  { %318 = vsyncadd [#allocation4], 4294967168 }
 0x1f3   :  { %198 = vsyncpa [#allocation3], 1 }
 0x1f4   :  { %199 = vsyncpa [#allocation4], 1 }

</bundles_post_ra>
